<compile_context>
chip_gen: v5e
topology: v5e:2x2
jax: 0.10.0
libtpu: 0.0.40
codegen_flags: <defaults>
</compile_context>

<pallas_src>
import functools

import jax
import jax.numpy as jnp
from jax.experimental import pallas as pl
from jax.experimental.pallas import tpu as pltpu


def _round_up(x, m):
    return ((x + m - 1) // m) * m


def _speaker_embed_kernel(masks_ref, table_ref, out_ref, *, num_speakers):
    """One grid step = TM flattened (seq, batch) rows.

    masks_ref : (TM, NS+1) f32 — speaker masks with the utterance mask folded
                in as the trailing column.
    table_ref : (NS, W)    f32 — all tables concatenated at stride D, lane
                padded once to W = round_up(T*D, 128); whole array resident
                in VMEM (constant operand, no re-fetch / double-buffering).
    out_ref   : (TM, W)    f32 — fused, lane-dense output slab tile.
    """
    full = masks_ref[...]                                     # (TM, NS+1)
    sm = full[:, :num_speakers]                               # (TM, NS)
    umask = full[:, num_speakers:num_speakers + 1]            # (TM, 1)

    # argmax over the speaker axis (matches torch.argmax first-max rule).
    ids = jnp.argmax(sm, axis=-1, keepdims=True)              # (TM, 1)

    # One-hot with the utterance mask folded in BEFORE the matmul, so the
    # masking rides through the MXU for free ((TM,NS) multiply, not (TM,W)).
    iota = jax.lax.broadcasted_iota(jnp.int32, sm.shape, 1)   # (TM, NS)
    onehot = (iota == ids).astype(jnp.float32) * umask        # (TM, NS)

    # Single MXU matmul writes the fused output tile directly: no live
    # intermediate to re-slice, one lane-dense output store stream.
    out_ref[...] = jnp.dot(onehot, table_ref[...],
                           preferred_element_type=jnp.float32)


def _choose_tm(num_rows, in_lanes, out_lanes, table_bytes,
               *, tm_max=512, min_steps=4, tile_budget=12 << 20):
    """Largest TM (multiple of 8) that fits the VMEM tile budget and still
    yields >= min_steps grid steps (pipelining + v7x 2-TC sharding)."""
    r8 = _round_up(num_rows, 8)
    per_row = 2 * 4 * (in_lanes + out_lanes)       # double-buffered f32 tiles
    budget = max(tile_budget - table_bytes, 1 << 20)
    tm_budget = max(8, (budget // per_row) // 8 * 8)
    tm_steps = max(8, _round_up(pl.cdiv(r8, min_steps), 8))
    return max(8, min(tm_max, tm_budget, tm_steps, r8))


def _pallas_embed_lookup(speaker_masks, utterance_masks, table_cat,
                         num_tables, model_dim):
    """Fused speaker-embedding lookup.

    speaker_masks  : (B, S, NS) f32
    utterance_masks: (B, S)     f32
    table_cat      : (NS, W)    f32 cached concatenated table (stride D)
    returns        : list of num_tables arrays of shape (S, B, D)
    """
    B, S, NS = speaker_masks.shape
    W = table_cat.shape[1]
    NSp = NS + 1
    R = S * B

    # (S, B) row order -> the output reshapes straight to the torch (S, B, D)
    # layout; only the narrow NS-wide inputs pay for this transpose.
    masks_sb = jnp.transpose(speaker_masks, (1, 0, 2)).reshape(R, NS)
    umask_sb = jnp.transpose(utterance_masks, (1, 0)).reshape(R, 1)
    masks_in = jnp.concatenate(
        [masks_sb.astype(jnp.float32), umask_sb.astype(jnp.float32)], axis=1)

    in_lanes = _round_up(NSp, 128)      # lane-padded width of the input tile
    table_bytes = int(table_cat.size) * 4
    TM = _choose_tm(R, in_lanes, W, table_bytes)
    R_pad = _round_up(R, TM)
    if R_pad > R:
        masks_in = jnp.pad(masks_in, ((0, R_pad - R), (0, 0)))

    # Explicit scoped-VMEM limit derived from the actual footprint
    # (double-buffered tiles + resident table + headroom).
    footprint = 2 * TM * (in_lanes + W) * 4 + table_bytes
    vmem_limit = int(min(max(footprint + (4 << 20), 16 << 20), 48 << 20))

    kernel = functools.partial(_speaker_embed_kernel, num_speakers=NS)

    grid_spec = pltpu.PrefetchScalarGridSpec(
        num_scalar_prefetch=0,
        grid=(R_pad // TM,),
        in_specs=[
            pl.BlockSpec((TM, NSp), lambda i: (i, 0)),
            # Constant operand: whole table resident in VMEM, no pipelining.
            pl.BlockSpec(memory_space=pltpu.MemorySpace.VMEM),
        ],
        out_specs=pl.BlockSpec((TM, W), lambda i: (i, 0)),
    )

    out = pl.pallas_call(
        kernel,
        out_shape=jax.ShapeDtypeStruct((R_pad, W), jnp.float32),
        grid_spec=grid_spec,
        compiler_params=pltpu.CompilerParams(
            dimension_semantics=("parallel",),
            vmem_limit_bytes=vmem_limit),
    )(masks_in, table_cat)

    results = []
    for t in range(num_tables):
        o = out[:R, t * model_dim:(t + 1) * model_dim]
        results.append(o.reshape(S, B, model_dim))
    return results


class SpeakerEmbeddingPallas:
    """JAX/Pallas port of Model/SpeakerEmbedding.SpeakerEmbedding."""

    def __init__(self, model_dim, num_speakers, text_dim, audio_dim,
                 visual_dim, if_shared_speaker_embedding, key):
        self.model_dim = model_dim
        self.if_shared_speaker_embedding = if_shared_speaker_embedding
        # nn.Embedding default init is N(0, 1); deterministic synthetic params.
        if if_shared_speaker_embedding:
            self.shared_table = jax.random.normal(
                key, (num_speakers, model_dim), dtype=jnp.float32)
            tables = [self.shared_table]
        else:
            k1, k2, k3 = jax.random.split(key, 3)
            self.text_table = jax.random.normal(
                k1, (num_speakers, model_dim), dtype=jnp.float32)
            self.audio_table = jax.random.normal(
                k2, (num_speakers, model_dim), dtype=jnp.float32)
            self.visual_table = jax.random.normal(
                k3, (num_speakers, model_dim), dtype=jnp.float32)
            tables = [self.text_table, self.audio_table, self.visual_table]
        self.num_tables = len(tables)

        # Concatenated table at stride model_dim, lane-padded ONCE here so
        # the per-call path never rebuilds the (NS, W) buffer.
        cat = jnp.concatenate(tables, axis=1)
        W = _round_up(self.num_tables * model_dim, 128)
        if W > cat.shape[1]:
            cat = jnp.pad(cat, ((0, 0), (0, W - cat.shape[1])))
        self.table_cat = cat

    def __call__(self, speaker_masks, utterance_masks):
        B, S, _ = speaker_masks.shape
        if utterance_masks is None:
            # None mask == multiply by ones (no masking).
            utterance_masks = jnp.ones((B, S), dtype=jnp.float32)
        outs = _pallas_embed_lookup(
            speaker_masks.astype(jnp.float32),
            utterance_masks.astype(jnp.float32),
            self.table_cat, self.num_tables, self.model_dim)
        if self.if_shared_speaker_embedding:
            return outs[0]                               # (S, B, D)
        return tuple(outs)                               # 3 x (S, B, D)


def _reference(speaker_masks, utterance_masks, table):
    ids = jnp.argmax(speaker_masks, axis=-1)
    emb = table[ids]
    if utterance_masks is not None:
        emb = emb * utterance_masks[..., None]
    return jnp.transpose(emb, (1, 0, 2))


if __name__ == "__main__":
    key = jax.random.PRNGKey(0)
    k_mask, k_umask, k_params_shared, k_params_sep = jax.random.split(key, 4)

    B, S, NUM_SPEAKERS, MODEL_DIM = 2, 8, 8, 32

    # speaker_masks: soft mask whose argmax picks the speaker id.
    speaker_masks = jax.random.uniform(
        k_mask, (B, S, NUM_SPEAKERS), dtype=jnp.float32)
    # utterance_masks: 0/1 validity mask.
    utterance_masks = (jax.random.uniform(k_umask, (B, S)) > 0.3).astype(
        jnp.float32)

    # --- shared embedding branch ---
    mod_shared = SpeakerEmbeddingPallas(
        MODEL_DIM, NUM_SPEAKERS, text_dim=16, audio_dim=16, visual_dim=16,
        if_shared_speaker_embedding=True, key=k_params_shared)
    out_shared = jax.block_until_ready(
        mod_shared(speaker_masks, utterance_masks))
    ref_shared = _reference(speaker_masks, utterance_masks,
                            mod_shared.shared_table)
    assert out_shared.shape == (S, B, MODEL_DIM)
    assert jnp.allclose(out_shared, ref_shared, atol=1e-5, rtol=1e-5)

    # shared branch with utterance_masks=None (no masking path).
    out_none = jax.block_until_ready(mod_shared(speaker_masks, None))
    ref_none = _reference(speaker_masks, None, mod_shared.shared_table)
    assert jnp.allclose(out_none, ref_none, atol=1e-5, rtol=1e-5)

    # --- separate (text/audio/visual) embedding branch, single fused call ---
    mod_sep = SpeakerEmbeddingPallas(
        MODEL_DIM, NUM_SPEAKERS, text_dim=16, audio_dim=16, visual_dim=16,
        if_shared_speaker_embedding=False, key=k_params_sep)
    out_t, out_a, out_v = mod_sep(speaker_masks, utterance_masks)
    out_t = jax.block_until_ready(out_t)
    out_a = jax.block_until_ready(out_a)
    out_v = jax.block_until_ready(out_v)
    assert jnp.allclose(out_t, _reference(speaker_masks, utterance_masks,
                                          mod_sep.text_table), atol=1e-5)
    assert jnp.allclose(out_a, _reference(speaker_masks, utterance_masks,
                                          mod_sep.audio_table), atol=1e-5)
    assert jnp.allclose(out_v, _reference(speaker_masks, utterance_masks,
                                          mod_sep.visual_table), atol=1e-5)

    print("KERNEL_OK")
</pallas_src>

<mosaic_0001>
module attributes {stable_mosaic.version = 11 : i64} {
  func.func @_speaker_embed_kernel(%arg0: i32, %arg1: memref<8x9xf32, #tpu.memory_space<vmem>>, %arg2: memref<8x128xf32, #tpu.memory_space<vmem>>, %arg3: memref<8x128xf32, #tpu.memory_space<vmem>>) attributes {dimension_semantics = [#tpu.dimension_semantics<parallel>], iteration_bounds = array<i64: 2>, scalar_prefetch = 0 : i64, scratch_operands = 0 : i64, tpu.core_type = #tpu.core_type<tc>, window_params = [{transform_indices = @transform_0, window_bounds = array<i64: 8, 9>}, {pipeline_mode = #tpu.pipeline_mode<synchronous>, transform_indices = @transform_1, window_bounds = array<i64: 8, 128>}, {transform_indices = @transform_2, window_bounds = array<i64: 8, 128>}]} {
    %c0 = arith.constant 0 : index
    %c0_0 = arith.constant 0 : index
    %0 = vector.load %arg1[%c0, %c0_0] : memref<8x9xf32, #tpu.memory_space<vmem>>, vector<8x9xf32>
    %1 = vector.extract_strided_slice %0 {offsets = [0, 0], sizes = [8, 8], strides = [1, 1]} : vector<8x9xf32> to vector<8x8xf32>
    %2 = vector.extract_strided_slice %0 {offsets = [0, 8], sizes = [8, 1], strides = [1, 1]} : vector<8x9xf32> to vector<8x1xf32>
    %3 = tpu.reduce_index %1 {axis = 1 : i32, kind = #tpu.reduction_kind<arg_max>} : vector<8x8xf32> -> vector<8xi32>
    %4 = vector.shape_cast %3 : vector<8xi32> to vector<8x1xi32>
    %5 = tpu.iota {dimensions = array<i32: 1>} : vector<8x8xi32>
    %6 = vector.broadcast %4 : vector<8x1xi32> to vector<8x8xi32>
    %7 = arith.cmpi eq, %5, %6 : vector<8x8xi32>
    %8 = arith.extui %7 : vector<8x8xi1> to vector<8x8xi32>
    %9 = arith.sitofp %8 : vector<8x8xi32> to vector<8x8xf32>
    %10 = vector.broadcast %2 : vector<8x1xf32> to vector<8x8xf32>
    %11 = arith.mulf %9, %10 : vector<8x8xf32>
    %c0_1 = arith.constant 0 : index
    %c0_2 = arith.constant 0 : index
    %12 = vector.load %arg2[%c0_1, %c0_2] : memref<8x128xf32, #tpu.memory_space<vmem>>, vector<8x128xf32>
    %cst = arith.constant dense<0.000000e+00> : vector<8x128xf32>
    %13 = tpu.matmul %11, %12, %cst {dimension_numbers = #tpu.dot_dimension_numbers<[1], [0], [0], [1], [0, 0, 1, 1], [], []>} : vector<8x8xf32>, vector<8x128xf32>, vector<8x128xf32> -> vector<8x128xf32>
    %c0_3 = arith.constant 0 : index
    %c0_4 = arith.constant 0 : index
    %14 = vector.load %arg3[%c0_3, %c0_4] : memref<8x128xf32, #tpu.memory_space<vmem>>, vector<8x128xf32>
    tpu.vector_store %arg3[%c0_3, %c0_4], %13 {strides = array<i32>} : memref<8x128xf32, #tpu.memory_space<vmem>>, vector<8x128xf32>,
    return
  }
  func.func @transform_0(%arg0: i32) -> (i32, i32) {
    %c0_i32 = arith.constant 0 : i32
    %c0_i32_0 = arith.constant 0 : i32
    return %arg0, %c0_i32 : i32, i32
  }
  func.func @transform_1(%arg0: i32) -> (i32, i32) {
    %c0_i32 = arith.constant 0 : i32
    %c0_i32_0 = arith.constant 0 : i32
    %c0_i32_1 = arith.constant 0 : i32
    return %c0_i32, %c0_i32_0 : i32, i32
  }
  func.func @transform_2(%arg0: i32) -> (i32, i32) {
    %c0_i32 = arith.constant 0 : i32
    %c0_i32_0 = arith.constant 0 : i32
    return %arg0, %c0_i32 : i32, i32
  }
}

</mosaic_0001>

<bundles_post_ra>
// kernel: tpu_custom_call.1
= control target key start
LH: loop header
LB: loop body
LE: loop exit
PB: predicated region body
PF: predicated region fallthrough
CT: control target
= control target key end

     0   :  { %7 = vsyncpa [#allocation3], 0  ;;  %s677_s0 = inlined_call_operand.hbm [shape: f32[16,9], index: 0, kind: input, shape index: {}]   ;;  %s678_s1 = inlined_call_operand.hbm [shape: f32[8,128], index: 1, kind: input, shape index: {}]   ;;  %s679_s2 = inlined_call_operand.hbm [shape: f32[16,128], index: 2, kind: output, shape index: {}]  }
   0x1   :  { %9 = vsyncpa [#allocation3 + $0x1], 0 }
   0x2   :  { %10 = vsyncpa [#allocation6], 0 }
   0x3   :  { %11 = vsyncpa [#allocation4], 0 }
   0x4   :  { %13 = vsyncpa [#allocation4 + $0x1], 0  ;;  %s539_s9 = smov 0   ;;  %s541_s10 = smov 0  }
   0x5   :  { %s543_s11 = smov 0   ;;  %s545_s12 = smov 0  }
   0x6 LB: > { %s560_s13 = sadd.s32 4294967295, %s519_s12   ;;  %s313_s14 = sadd.s32 4294967294, %s519_s12   ;;  %s519_s12 = sphi %s545_s12, %s689_s12   ;;  %s515_s11 = sphi %s543_s11, %s688_s11   ;;  %s511_s10 = sphi %s541_s10, %s687_s10   ;;  %s507_s9 = sphi %s539_s9, %s686_s9  }
   0x7   : > { %p39_p0 = scmp.ne.s32.totalorder %s511_s10, %s507_s9  ;;  %p40_p1 = scmp.eq.s32.totalorder %s560_s13, 0 }
   0x8   : > { %p84_p2 = scmp.eq.s32.totalorder %s560_s13, 1  ;;  %p90_p3 = scmp.eq.s32.totalorder %s313_s14, 1 }
   0x9   : > { %p569_p4 = por %p40_p1, %p39_p0  ;;  %p314_p5 = scmp.ge.s32.totalorder %s519_s12, 1 }
   0xa   : > { %p574_p6 = por %p90_p3, %p39_p0  ;;  %p97_p7 = scmp.lt.s32.totalorder %s519_s12, 3 }
   0xb   : > { %s109_s19 = sshll.u32 %s678_s1, 4  ;;  %s521_s21 = smov [#allocation5]   ;;  %s110_s19 = int_to_ptr.hbm [resolvable:$true] %s109_s19 }
   0xc   : > { %p582_p8 = pnand %p314_p5, %p97_p7  ;;  %s111_s22 = sshll.u32 %s521_s21, 4  ;;  %s112_s22 = int_to_ptr.vmem [resolvable:$true] %s111_s22 }
   0xd   : > { %s592_s23 = sadd.s32 1, %s519_s12   ;;  %s26_s24 = sadd.s32 1, %s515_s11 }
   0xe   : > { %p337_p10 = pneg %p582_p8  ;;  %s23_s25 = ssub.s32 %s519_s12, %s592_s23 }
   0xf   : > { %p24_p12 = scmp.eq.s32.totalorder %s23_s25, 0  ;;  %p33_p13 = scmp.ne.s32.totalorder %s515_s11, %s511_s10 }
  0x10   : > { %p338_p11 = pnand %p337_p10, %p40_p1  ;;  %p34_p0 = scmp.eq.s32.totalorder %s519_s12, 0 }
  0x11   : > { %s601_s26 = scalar_select %p24_p12, %s515_s11, %s26_s24  }
  0x12   : > { %340 = dma.hbm_to_vmem [thread:$0]  (!%p338_p11), %s110_s19, 128, %s112_s22, [#allocation6]  }
  0x13   : > { %p605_p3 = por %p84_p2, %p33_p13  ;;  %p350_p5 = scmp.lt.s32.totalorder %s519_s12, 2 }
  0x14   : > { %s122_s28 = sand.u32 1, %s515_s11   ;;  %s318_s29 = sshll.u32 %s519_s12, 3 }
  0x15   : > { %p35_p7 = por %p34_p0, %p33_p13  ;;  %s317_s30 = sshll.u32 %s122_s28, 3 }
  0x16   : > { %s130_s5 = scalar_lea.hbm %s677_s0, %s318_s29  ;;  %s126_s7 = scalar_lea.vmem [#allocation2], %s317_s30 }
  0x17   : > { %s132_s6 = sshll.u32 %s130_s5, 4  ;;  %s134_s8 = sshll.u32 %s126_s7, 4  ;;  %s133_s6 = int_to_ptr.hbm [resolvable:$true] %s132_s6  ;;  %s135_s8 = int_to_ptr.vmem [resolvable:$true] %s134_s8 }
  0x18   : > { %p615_p10 = pnand %p350_p5, %p35_p7  ;;  %s123_s17 = scalar_lea.sflag [#allocation3], %s122_s28 }
  0x19   : > { %s419_s18 = sshra.s32 %s133_s6, 4  ;;  %s426_s24 = scalar_lea.hbm %s677_s0, 16  ;;  %s420_s18 = int_to_ptr.hbm [resolvable:$true] %s419_s18 }
  0x1a   : > { %s421_s19 = scalar_lea.hbm %s420_s18, 8  ;;  %p423_p11 = pneg %p615_p10 }
  0x1b   : > { %p422_p2 = scmp.ne.s32.totalorder %s420_s18, %s421_s19  ;;  %p427_p0 = scmp.lt.s32.totalorder %s420_s18, %s677_s0 }
  0x1c   : > { %p428_p5 = scmp.lt.s32.totalorder %s426_s24, %s421_s19 }
  0x1d   : > { %p424_p12 = pnand %p423_p11, %p422_p2 }
  0x1e   : > { %p429_p7 = por %p428_p5, %p427_p0 }
  0x1f   : > { %p425_p13 = pneg %p424_p12 }
  0x21   : > { %p430_p9 = pnand %p429_p7, %p425_p13 }
  0x23   : > { %433 = shalt.err (!%p430_p9)
}
  0x24   : > { %344 = dma.hbm_to_vmem [thread:$0]  (!%p615_p10), %s133_s6, 128, %s135_s8, %s123_s17  }
  0x25   : > { %143 = sbr.rel (%p582_p8) target bundleno = 313 (0x139), region = 28  ;;  %s632_s28 = sand.u32 (!%p582_p8), 1, %s511_s10  }
  0x26   : > { %s320_s30 = sshll.u32 (!%p582_p8), %s632_s28, 3  ;;  %s146_s3 = scalar_lea.sflag (!%p582_p8), [#allocation3], %s632_s28 }
  0x27   : > { %s149_s4 = scalar_lea.vmem (!%p582_p8), [#allocation2], %s320_s30 }
  0x2a   : > { %494 = dma.done.wait (%p569_p4), %s146_s3, 128  }
  0x2b   : > { %496 = vsyncadd (%p569_p4), %s146_s3, 4294967168 }
  0x2c   : > { %498 = dma.done.wait (%p40_p1), [#allocation6], 128  }
  0x2d   : > { %500 = vsyncadd (%p40_p1), [#allocation6], 4294967168  ;;  %v522_v0 = vmov 8   ;;  %vm177_vm0 = vcmask 64512   ;;  %v176_v1 = vld [vmem:[%s149_s4] sm:$0xff]  ;;  %v192_v3 = vld [vmem:[#allocation5] sm:$0xff]  ;;  %v181_v4 = vlaneseq }
  0x2e   : > { %388 = vset.pattern.permute.xlu0 %v522_v0  ;;  %v178_v2 = vsel %vm177_vm0, %v176_v1, -inf  ;;  %211 = vmatpush.msra.mxu0 %v192_v3  ;;  %v523_v7 = vmov 0.0   ;;  %s326_s15 = sshll.u32 %s560_s13, 3  ;;  %s175_s7 = scalar_lea.vmem [#allocation7], %s320_s30 }
  0x2f   : > { %179 = vmax.index.xlane.f32.xlu0 %v178_v2  ;;  %v182_v6 = vand.u32 127, %v181_v4  ;;  %s228_s6 = scalar_lea.hbm %s679_s2, %s326_s15  ;;  %s230_s8 = sshll.u32 %s175_s7, 4  ;;  %s231_s8 = int_to_ptr.vmem [resolvable:$true] %s230_s8 }
  0x30   : > { %s232_s14 = sshll.u32 %s228_s6, 4  ;;  %s218_s17 = scalar_lea.sflag [#allocation4], %s632_s28  ;;  %s233_s14 = int_to_ptr.hbm [resolvable:$true] %s232_s14 }
  0x31   : > { %s463_s18 = sshra.s32 %s233_s14, 4  ;;  %s469_s22 = scalar_lea.hbm %s679_s2, 16  ;;  %s464_s18 = int_to_ptr.hbm [resolvable:$true] %s463_s18 }
  0x32   : > { %s465_s19 = scalar_lea.hbm %s464_s18, 8  ;;  %p470_p9 = scmp.lt.s32.totalorder %s464_s18, %s679_s2 }
  0x33   : > { %p466_p1 = scmp.ne.s32.totalorder %s464_s18, %s465_s19  ;;  %p471_p10 = scmp.lt.s32.totalorder %s469_s22, %s465_s19 }
  0x35   : > { %p467_p4 = pnand %p466_p1, %p605_p3  ;;  %p472_p2 = por %p471_p10, %p470_p9 }
  0x37   : > { %p468_p8 = pneg %p467_p4 }
  0x39   : > { %p473_p11 = pnand %p472_p2, %p468_p8 }
  0x43   : > { %188 = vperm.xlu0 %388, %v176_v1  }
  0xa2   : > { %v180_v5 = vpop.xlane.xlu0 %179 }
  0xa3   : > { %vm183_vm1 = vcmp.eq.s32.totalorder %v182_v6, %v180_v5 }
  0xa4   : > { %v323_v8 = vsel %vm183_vm1, 1.0, %v523_v7 }
  0xb5   : > { %v189_v9 = vpop.permute.xlu0 %188 }
  0xb6   : > { %v191_v10 = vmul.f32 %v323_v8, %v189_v9 }
  0xb8   : > { %324 = vmatmul.msk.f32.vlgmr.msra.gmra.mxu0 %vm177_vm0, %v191_v10 }
 0x135   : > { %v213_v11 = vpop.f32.mrf.mxu0 }
 0x136   : > { %216 = vst [vmem:[%s175_s7] sm:$0xff] %v213_v11 }
 0x137   : > { %476 = shalt.err (!%p473_p11)
}
 0x138   : > { %335 = dma.vmem_to_hbm [thread:$0]  (%p605_p3), %s231_s8, 128, %s233_s14, %s218_s17  }
 0x139 PF: > { %s244_s29 = sand.u32 1, %s507_s9   ;;  %p685_p12 = scmp.ge.s32.totalorder %s519_s12, 2 }
 0x13a   : > { %s245_s28 = scalar_lea.sflag [#allocation4], %s244_s29 }
 0x13b   : > { %p346_p13 = pnand %p685_p12, %p574_p6 }
 0x13d   : > { %p347_p0 = pneg %p346_p13 }
 0x13f   : > { %502 = dma.done.wait (%p347_p0), %s245_s28, 128  }
 0x140   : > { %504 = vsyncadd (%p347_p0), %s245_s28, 4294967168  ;;  %p16_p5 = scmp.ge.s32.totalorder %s592_s23, 4   ;;  %s686_s9 = smov %s511_s10 }
 0x141   : > { %s687_s10 = smov %s515_s11  ;;  %s688_s11 = smov %s601_s26 }
 0x142   : > { %s689_s12 = smov %s592_s23  ;;  %18 = sbr.rel (!%p16_p5) target bundleno = 6 (0x6), region = 77 }
 0x147   :  { %251 = vsyncpa [#allocation3], 1 }
 0x148   :  { %253 = vsyncpa [#allocation3 + $0x1], 1 }
 0x149   :  { %254 = vsyncpa [#allocation6], 1 }
 0x14a   :  { %255 = vsyncpa [#allocation4], 1 }
 0x14b   :  { %257 = vsyncpa [#allocation4 + $0x1], 1 }

</bundles_post_ra>
